<compile_context>
chip_gen: v6e
topology: v6e:2x2x1
jax: 0.10.0
libtpu: 0.0.40
codegen_flags: <defaults>
</compile_context>

<pallas_src>
import jax
import jax.numpy as jnp
from jax.experimental import pallas as pl
from jax.experimental.pallas import tpu as pltpu

LANE = 128
SUBLANE = 8
NEG_BIG = -1e30  # "minus infinity" that stays finite through bf16 / 0-weight matmul


def _round_up(n, m):
    return (n + m - 1) // m * m


def seqnet_kernel(x_ref, w1_ref, b1_ref, w2_ref, b2_ref, w3_ref, b3_ref, o_ref):
    # x tile: [TB, in_p] bf16; weights: bf16 [in, out] layout; biases: f32 [1, out].
    x = x_ref[...]

    # --- lin1 + sigmoid (bf16 MXU, f32 accumulate, f32 elementwise/EUP) ---
    z1 = jnp.dot(x, w1_ref[...], preferred_element_type=jnp.float32) + b1_ref[...]
    h1 = jax.nn.sigmoid(z1)

    # --- lin2 + log_softmax(dim=1) ---
    # Padded hidden2 columns carry b2 = NEG_BIG, so they vanish from the
    # normalization (exp underflows to 0); no in-kernel masking needed.
    z2 = jnp.dot(h1.astype(jnp.bfloat16), w2_ref[...],
                 preferred_element_type=jnp.float32) + b2_ref[...]
    m = jnp.max(z2, axis=-1, keepdims=True)
    shifted = z2 - m
    lse = jnp.log(jnp.sum(jnp.exp(shifted), axis=-1, keepdims=True))
    ls = shifted - lse

    # --- lin3 ---  (padded rows of w3 are exactly 0 -> padded log-probs drop out)
    out = jnp.dot(ls.astype(jnp.bfloat16), w3_ref[...],
                  preferred_element_type=jnp.float32) + b3_ref[...]
    o_ref[...] = out.astype(o_ref.dtype)


def init_params(key, input_size, hidden1, hidden2, output_size):
    """PyTorch-Linear-style uniform init. Weights stored TRANSPOSED ([in, out])."""
    ks = jax.random.split(key, 6)

    def lin(kw, kb, fan_in, fan_out):
        bound = 1.0 / jnp.sqrt(fan_in)
        w = jax.random.uniform(kw, (fan_in, fan_out), jnp.float32, -bound, bound)
        b = jax.random.uniform(kb, (1, fan_out), jnp.float32, -bound, bound)
        return w, b

    w1, b1 = lin(ks[0], ks[1], input_size, hidden1)
    w2, b2 = lin(ks[2], ks[3], hidden1, hidden2)
    w3, b3 = lin(ks[4], ks[5], hidden2, output_size)
    return (w1, b1, w2, b2, w3, b3)


def prepare_params(params):
    """One-time prep: zero-pad all feature dims to lane width (128), cast matmul
    weights to bf16, and fold the softmax padding mask into b2 (NEG_BIG)."""
    w1, b1, w2, b2, w3, b3 = params
    in_s, h1 = w1.shape
    _, h2 = w2.shape
    _, out = w3.shape
    in_p, h1_p, h2_p, out_p = (_round_up(d, LANE) for d in (in_s, h1, h2, out))

    def pad_w(w, rows, cols):
        return jnp.pad(w, ((0, rows - w.shape[0]), (0, cols - w.shape[1])))

    def pad_b(b, cols, fill=0.0):
        return jnp.pad(b, ((0, 0), (0, cols - b.shape[1])), constant_values=fill)

    kparams = (
        pad_w(w1, in_p, h1_p).astype(jnp.bfloat16),
        pad_b(b1, h1_p).astype(jnp.float32),
        pad_w(w2, h1_p, h2_p).astype(jnp.bfloat16),
        pad_b(b2, h2_p, fill=NEG_BIG).astype(jnp.float32),  # mask folded into bias
        pad_w(w3, h2_p, out_p).astype(jnp.bfloat16),
        pad_b(b3, out_p).astype(jnp.float32),
    )
    dims = dict(in_size=in_s, h1=h1, h2=h2, out=out,
                in_p=in_p, h1_p=h1_p, h2_p=h2_p, out_p=out_p)
    return kparams, dims


def seqnet_forward(x, kernel_params, dims, *, tb=256):
    """x: [B, ...] -> flattened to [B, input_size].
    NOTE: in a training loop, hoist the flatten/cast/pad of x out of the hot
    path (it is a separate XLA op); here it runs once per call."""
    B = x.shape[0]
    x2d = x.reshape(B, -1)

    in_p, out_p = dims["in_p"], dims["out_p"]
    h1_p, h2_p = dims["h1_p"], dims["h2_p"]

    # Batch tile: multiple of 8 sublanes, capped so the per-step footprint stays
    # small (well under the 32 MiB default scoped VMEM on v7x).
    tb = min(tb, _round_up(B, SUBLANE))
    b_pad = _round_up(B, tb)

    # Single fused pad (rows + lanes) + bf16 cast: lane-dense tiles, half the
    # HBM->VMEM traffic vs f32, and no cast work inside the kernel.
    x2d = jnp.pad(x2d, ((0, b_pad - B), (0, in_p - x2d.shape[1]))).astype(jnp.bfloat16)

    w1, b1, w2, b2, w3, b3 = kernel_params

    flops = 2 * b_pad * (in_p * h1_p + h1_p * h2_p + h2_p * out_p)
    transcendentals = b_pad * (h1_p + 2 * h2_p)          # sigmoid + exp/log of softmax
    bytes_accessed = (b_pad * in_p * 2 + b_pad * out_p * 4
                      + (w1.size + w2.size + w3.size) * 2
                      + (b1.size + b2.size + b3.size) * 4)

    out = pl.pallas_call(
        seqnet_kernel,
        out_shape=jax.ShapeDtypeStruct((b_pad, out_p), jnp.float32),
        grid=(b_pad // tb,),
        in_specs=[
            pl.BlockSpec((tb, in_p), lambda i: (i, 0)),    # x tile (pipelined)
            pl.BlockSpec((in_p, h1_p), lambda i: (0, 0)),  # weights/biases: constant
            pl.BlockSpec((1, h1_p), lambda i: (0, 0)),     # block -> VMEM-resident
            pl.BlockSpec((h1_p, h2_p), lambda i: (0, 0)),
            pl.BlockSpec((1, h2_p), lambda i: (0, 0)),
            pl.BlockSpec((h2_p, out_p), lambda i: (0, 0)),
            pl.BlockSpec((1, out_p), lambda i: (0, 0)),
        ],
        out_specs=pl.BlockSpec((tb, out_p), lambda i: (i, 0)),
        compiler_params=pltpu.CompilerParams(
            dimension_semantics=("parallel",)),            # megacore split on v7x
        cost_estimate=pl.CostEstimate(
            flops=flops, transcendentals=transcendentals,
            bytes_accessed=bytes_accessed),
    )(x2d, w1, b1, w2, b2, w3, b3)

    # Slice padded rows / lanes back to the logical output.
    return out[:B, :dims["out"]]


def reference_forward(x, params):
    """Plain-JAX f32 reference of the PyTorch forward, for verification."""
    w1, b1, w2, b2, w3, b3 = params
    B = x.shape[0]
    x2d = x.reshape(B, -1)
    h1 = jax.nn.sigmoid(x2d @ w1 + b1)
    z2 = h1 @ w2 + b2
    ls = jax.nn.log_softmax(z2, axis=1)
    return ls @ w3 + b3


if __name__ == "__main__":
    # Small shapes consistent with the module: batch=8, input flattened from
    # [2, 4, 4] -> input_size=32, hidden1=64, hidden2=64, output=16.
    # hidden2=64 (< 128) deliberately exercises the padded-softmax path.
    B = 8
    input_shape = (B, 2, 4, 4)
    input_size = 2 * 4 * 4
    hidden1, hidden2, output_size = 64, 64, 16

    key = jax.random.PRNGKey(0)
    kx, kp = jax.random.split(key)
    x = jax.random.normal(kx, input_shape, dtype=jnp.float32)
    params = init_params(kp, input_size, hidden1, hidden2, output_size)

    kparams, dims = prepare_params(params)          # one-time pad + bf16 cast
    out = seqnet_forward(x, kparams, dims)
    out = jax.block_until_ready(out)

    ref = reference_forward(x, params)
    assert out.shape == (B, output_size)
    assert bool(jnp.all(jnp.isfinite(out))), "non-finite values in kernel output"
    # bf16 matmul operands (f32 accumulate) -> loosened tolerance vs f32 reference.
    assert jnp.allclose(out, ref, atol=5e-2, rtol=5e-2), "mismatch vs reference"

    print("KERNEL_OK")
</pallas_src>

<mosaic_0001>
module attributes {stable_mosaic.version = 11 : i64} {
  func.func @seqnet_kernel(%arg0: i32, %arg1: memref<8x128xbf16, #tpu.memory_space<vmem>>, %arg2: memref<128x128xbf16, #tpu.memory_space<vmem>>, %arg3: memref<1x128xf32, #tpu.memory_space<vmem>>, %arg4: memref<128x128xbf16, #tpu.memory_space<vmem>>, %arg5: memref<1x128xf32, #tpu.memory_space<vmem>>, %arg6: memref<128x128xbf16, #tpu.memory_space<vmem>>, %arg7: memref<1x128xf32, #tpu.memory_space<vmem>>, %arg8: memref<8x128xf32, #tpu.memory_space<vmem>>) attributes {dimension_semantics = [#tpu.dimension_semantics<parallel>], iteration_bounds = array<i64: 1>, scalar_prefetch = 0 : i64, scratch_operands = 0 : i64, tpu.core_type = #tpu.core_type<tc>, window_params = [{transform_indices = @transform_0, window_bounds = array<i64: 8, 128>}, {pipeline_mode = #tpu.pipeline_mode<synchronous>, transform_indices = @transform_1, window_bounds = array<i64: 128, 128>}, {pipeline_mode = #tpu.pipeline_mode<synchronous>, transform_indices = @transform_2, window_bounds = array<i64: 1, 128>}, {pipeline_mode = #tpu.pipeline_mode<synchronous>, transform_indices = @transform_3, window_bounds = array<i64: 128, 128>}, {pipeline_mode = #tpu.pipeline_mode<synchronous>, transform_indices = @transform_4, window_bounds = array<i64: 1, 128>}, {pipeline_mode = #tpu.pipeline_mode<synchronous>, transform_indices = @transform_5, window_bounds = array<i64: 128, 128>}, {pipeline_mode = #tpu.pipeline_mode<synchronous>, transform_indices = @transform_6, window_bounds = array<i64: 1, 128>}, {transform_indices = @transform_7, window_bounds = array<i64: 8, 128>}]} {
    %c0 = arith.constant 0 : index
    %c0_0 = arith.constant 0 : index
    %0 = vector.load %arg1[%c0, %c0_0] : memref<8x128xbf16, #tpu.memory_space<vmem>>, vector<8x128xbf16>
    %c0_1 = arith.constant 0 : index
    %c0_2 = arith.constant 0 : index
    %1 = vector.load %arg2[%c0_1, %c0_2] : memref<128x128xbf16, #tpu.memory_space<vmem>>, vector<128x128xbf16>
    %cst = arith.constant dense<0.000000e+00> : vector<8x128xf32>
    %2 = tpu.matmul %0, %1, %cst {dimension_numbers = #tpu.dot_dimension_numbers<[1], [0], [0], [1], [0, 0, 1, 1], [], []>} : vector<8x128xbf16>, vector<128x128xbf16>, vector<8x128xf32> -> vector<8x128xf32>
    %c0_3 = arith.constant 0 : index
    %c0_4 = arith.constant 0 : index
    %3 = vector.load %arg3[%c0_3, %c0_4] : memref<1x128xf32, #tpu.memory_space<vmem>>, vector<1x128xf32>
    %4 = vector.broadcast %3 : vector<1x128xf32> to vector<8x128xf32>
    %5 = arith.addf %2, %4 : vector<8x128xf32>
    %6 = arith.negf %5 : vector<8x128xf32>
    %7 = math.exp %6 : vector<8x128xf32>
    %cst_5 = arith.constant 1.000000e+00 : f32
    %8 = vector.broadcast %cst_5 : f32 to vector<8x128xf32>
    %9 = arith.addf %8, %7 : vector<8x128xf32>
    %10 = arith.divf %8, %9 : vector<8x128xf32>
    %11 = arith.truncf %10 : vector<8x128xf32> to vector<8x128xbf16>
    %c0_6 = arith.constant 0 : index
    %c0_7 = arith.constant 0 : index
    %12 = vector.load %arg4[%c0_6, %c0_7] : memref<128x128xbf16, #tpu.memory_space<vmem>>, vector<128x128xbf16>
    %cst_8 = arith.constant dense<0.000000e+00> : vector<8x128xf32>
    %13 = tpu.matmul %11, %12, %cst_8 {dimension_numbers = #tpu.dot_dimension_numbers<[1], [0], [0], [1], [0, 0, 1, 1], [], []>} : vector<8x128xbf16>, vector<128x128xbf16>, vector<8x128xf32> -> vector<8x128xf32>
    %c0_9 = arith.constant 0 : index
    %c0_10 = arith.constant 0 : index
    %14 = vector.load %arg5[%c0_9, %c0_10] : memref<1x128xf32, #tpu.memory_space<vmem>>, vector<1x128xf32>
    %15 = vector.broadcast %14 : vector<1x128xf32> to vector<8x128xf32>
    %16 = arith.addf %13, %15 : vector<8x128xf32>
    %cst_11 = arith.constant dense<0xFF800000> : vector<8xf32>
    %17 = vector.multi_reduction <maximumf>, %16, %cst_11 [1] : vector<8x128xf32> to vector<8xf32>
    %18 = vector.shape_cast %17 : vector<8xf32> to vector<8x1xf32>
    %19 = vector.broadcast %18 : vector<8x1xf32> to vector<8x128xf32>
    %20 = arith.subf %16, %19 : vector<8x128xf32>
    %21 = math.exp %20 : vector<8x128xf32>
    %cst_12 = arith.constant dense<0.000000e+00> : vector<8xf32>
    %22 = vector.multi_reduction <add>, %21, %cst_12 [1] : vector<8x128xf32> to vector<8xf32>
    %23 = vector.shape_cast %22 : vector<8xf32> to vector<8x1xf32>
    %24 = math.log %23 : vector<8x1xf32>
    %25 = vector.broadcast %24 : vector<8x1xf32> to vector<8x128xf32>
    %26 = arith.subf %20, %25 : vector<8x128xf32>
    %27 = arith.truncf %26 : vector<8x128xf32> to vector<8x128xbf16>
    %c0_13 = arith.constant 0 : index
    %c0_14 = arith.constant 0 : index
    %28 = vector.load %arg6[%c0_13, %c0_14] : memref<128x128xbf16, #tpu.memory_space<vmem>>, vector<128x128xbf16>
    %cst_15 = arith.constant dense<0.000000e+00> : vector<8x128xf32>
    %29 = tpu.matmul %27, %28, %cst_15 {dimension_numbers = #tpu.dot_dimension_numbers<[1], [0], [0], [1], [0, 0, 1, 1], [], []>} : vector<8x128xbf16>, vector<128x128xbf16>, vector<8x128xf32> -> vector<8x128xf32>
    %c0_16 = arith.constant 0 : index
    %c0_17 = arith.constant 0 : index
    %30 = vector.load %arg7[%c0_16, %c0_17] : memref<1x128xf32, #tpu.memory_space<vmem>>, vector<1x128xf32>
    %31 = vector.broadcast %30 : vector<1x128xf32> to vector<8x128xf32>
    %32 = arith.addf %29, %31 : vector<8x128xf32>
    %c0_18 = arith.constant 0 : index
    %c0_19 = arith.constant 0 : index
    %33 = vector.load %arg8[%c0_18, %c0_19] : memref<8x128xf32, #tpu.memory_space<vmem>>, vector<8x128xf32>
    tpu.vector_store %arg8[%c0_18, %c0_19], %32 {strides = array<i32>} : memref<8x128xf32, #tpu.memory_space<vmem>>, vector<8x128xf32>,
    return
  }
  func.func @transform_0(%arg0: i32) -> (i32, i32) {
    %c0_i32 = arith.constant 0 : i32
    %c0_i32_0 = arith.constant 0 : i32
    return %arg0, %c0_i32 : i32, i32
  }
  func.func @transform_1(%arg0: i32) -> (i32, i32) {
    %c0_i32 = arith.constant 0 : i32
    %c0_i32_0 = arith.constant 0 : i32
    %c0_i32_1 = arith.constant 0 : i32
    return %c0_i32, %c0_i32_0 : i32, i32
  }
  func.func @transform_2(%arg0: i32) -> (i32, i32) {
    %c0_i32 = arith.constant 0 : i32
    %c0_i32_0 = arith.constant 0 : i32
    %c0_i32_1 = arith.constant 0 : i32
    return %c0_i32, %c0_i32_0 : i32, i32
  }
  func.func @transform_3(%arg0: i32) -> (i32, i32) {
    %c0_i32 = arith.constant 0 : i32
    %c0_i32_0 = arith.constant 0 : i32
    %c0_i32_1 = arith.constant 0 : i32
    return %c0_i32, %c0_i32_0 : i32, i32
  }
  func.func @transform_4(%arg0: i32) -> (i32, i32) {
    %c0_i32 = arith.constant 0 : i32
    %c0_i32_0 = arith.constant 0 : i32
    %c0_i32_1 = arith.constant 0 : i32
    return %c0_i32, %c0_i32_0 : i32, i32
  }
  func.func @transform_5(%arg0: i32) -> (i32, i32) {
    %c0_i32 = arith.constant 0 : i32
    %c0_i32_0 = arith.constant 0 : i32
    %c0_i32_1 = arith.constant 0 : i32
    return %c0_i32, %c0_i32_0 : i32, i32
  }
  func.func @transform_6(%arg0: i32) -> (i32, i32) {
    %c0_i32 = arith.constant 0 : i32
    %c0_i32_0 = arith.constant 0 : i32
    %c0_i32_1 = arith.constant 0 : i32
    return %c0_i32, %c0_i32_0 : i32, i32
  }
  func.func @transform_7(%arg0: i32) -> (i32, i32) {
    %c0_i32 = arith.constant 0 : i32
    %c0_i32_0 = arith.constant 0 : i32
    return %arg0, %c0_i32 : i32, i32
  }
}

</mosaic_0001>

<bundles_post_ra>
// kernel: tpu_custom_call.1
= control target key start
LH: loop header
LB: loop body
LE: loop exit
PB: predicated region body
PF: predicated region fallthrough
CT: control target
= control target key end

     0   :  { %12 = vsyncpa [#allocation3], 0  ;;  %s827_s0 = inlined_call_operand.hbm [shape: bf16[8,128], index: 0, kind: input, shape index: {}]   ;;  %s828_s1 = inlined_call_operand.hbm [shape: bf16[128,128], index: 1, kind: input, shape index: {}]   ;;  %s829_s2 = inlined_call_operand.vmem [shape: f32[1,128], index: 2, kind: input, shape index: {}]   ;;  %s830_s3 = inlined_call_operand.hbm [shape: bf16[128,128], index: 3, kind: input, shape index: {}]   ;;  %s831_s4 = inlined_call_operand.vmem [shape: f32[1,128], index: 4, kind: input, shape index: {}]   ;;  %s832_s5 = inlined_call_operand.hbm [shape: bf16[128,128], index: 5, kind: input, shape index: {}]   ;;  %s833_s6 = inlined_call_operand.vmem [shape: f32[1,128], index: 6, kind: input, shape index: {}]   ;;  %s834_s7 = inlined_call_operand.hbm [shape: f32[8,128], index: 7, kind: output, shape index: {}]  }
   0x1   :  { %13 = vsyncpa [#allocation6], 0 }
   0x2   :  { %14 = vsyncpa [#allocation9], 0 }
   0x3   :  { %15 = vsyncpa [#allocation4], 0  ;;  %s715_s24 = smov [#allocation5]  }
   0x4   :  { %s31_s25 = sshll.u32 %s715_s24, 4  ;;  %s32_s25 = int_to_ptr.vmem [resolvable:$true] %s31_s25 }
   0x5   :  { %s615_s26 = scalar_lea.vmem %s32_s25, 1024  ;;  %p620_p1 = scmp.lt.s32.totalorder %s32_s25, %s32_s25 }
   0x6   :  { %p616_p0 = scmp.ne.s32.totalorder %s32_s25, %s615_s26  ;;  %p621_p2 = scmp.lt.s32.totalorder %s615_s26, %s615_s26 }
   0x8   :  { %p622_p3 = por %p621_p2, %p620_p1 }
   0xa   :  { %p623_p4 = pnand %p622_p3, %p616_p0 }
   0xc   :  { %626 = shalt.err (!%p623_p4)
}
   0xd   :  { %s716_s27 = smov 64   ;;  %s717_s28 = smov 4  }
   0xe   :  { %37 = dma.hbm_to_vmem [thread:$0]  %s828_s1, 1024, %s32_s25, [#allocation6], %s716_s27, %s716_s27, %s717_s28  }
   0xf   :  { %s718_s8 = smov [#allocation2]   ;;  %s719_s10 = smov [#allocation7]  }
  0x10   :  { %s22_s9 = sshll.u32 %s718_s8, 4  ;;  %s45_s11 = sshll.u32 %s719_s10, 4  ;;  %s23_s9 = int_to_ptr.vmem [resolvable:$true] %s22_s9  ;;  %s46_s11 = int_to_ptr.vmem [resolvable:$true] %s45_s11 }
  0x11   :  { %s635_s12 = scalar_lea.vmem %s23_s9, 64  ;;  %p640_p6 = scmp.lt.s32.totalorder %s23_s9, %s23_s9 }
  0x12   :  { %p636_p5 = scmp.ne.s32.totalorder %s23_s9, %s635_s12  ;;  %p641_p7 = scmp.lt.s32.totalorder %s635_s12, %s635_s12 }
  0x14   :  { %p642_p8 = por %p641_p7, %p640_p6 }
  0x16   :  { %p643_p9 = pnand %p642_p8, %p636_p5 }
  0x18   :  { %646 = shalt.err (!%p643_p9)
}
  0x19   :  { %25 = dma.hbm_to_vmem [thread:$0]  %s827_s0, 64, %s23_s9, [#allocation3]  }
  0x1a   :  { %s655_s15 = scalar_lea.vmem %s46_s11, 1024  ;;  %p660_p11 = scmp.lt.s32.totalorder %s46_s11, %s46_s11 }
  0x1b   :  { %p656_p10 = scmp.ne.s32.totalorder %s46_s11, %s655_s15  ;;  %p661_p12 = scmp.lt.s32.totalorder %s655_s15, %s655_s15 }
  0x1d   :  { %p662_p13 = por %p661_p12, %p660_p11 }
  0x1f   :  { %p663_p0 = pnand %p662_p13, %p656_p10 }
  0x21   :  { %666 = shalt.err (!%p663_p0)
}
  0x22   :  { %51 = dma.hbm_to_vmem [thread:$0]  %s830_s3, 1024, %s46_s11, [#allocation6], %s716_s27, %s716_s27, %s717_s28  }
  0x23   :  { %s720_s17 = smov [#allocation8]  }
  0x24   :  { %s59_s18 = sshll.u32 %s720_s17, 4  ;;  %s60_s18 = int_to_ptr.vmem [resolvable:$true] %s59_s18 }
  0x25   :  { %s675_s19 = scalar_lea.vmem %s60_s18, 1024  ;;  %p680_p2 = scmp.lt.s32.totalorder %s60_s18, %s60_s18 }
  0x26   :  { %p676_p1 = scmp.ne.s32.totalorder %s60_s18, %s675_s19  ;;  %p681_p3 = scmp.lt.s32.totalorder %s675_s19, %s675_s19 }
  0x28   :  { %p682_p4 = por %p681_p3, %p680_p2 }
  0x2a   :  { %p683_p5 = pnand %p682_p4, %p676_p1 }
  0x2c   :  { %686 = shalt.err (!%p683_p5)
}
  0x2d   :  { %65 = dma.hbm_to_vmem [thread:$0]  %s832_s5, 1024, %s60_s18, [#allocation9], %s716_s27, %s716_s27, %s717_s28  }
  0x2e   :  { %707 = dma.done.wait [#allocation3], 64  }
  0x2f   :  { %708 = vsyncadd [#allocation3], 4294967232 }
  0x30   :  { %709 = dma.done.wait [#allocation6], 2048  }
  0x31   :  { %710 = vsyncadd [#allocation6], 4294965248 }
  0x32   :  { %711 = dma.done.wait [#allocation9], 1024  }
  0x33   :  { %712 = vsyncadd [#allocation9], 4294966272  ;;  %v721_v0 = vmov 0.0   ;;  %vm722_vm0 = vmmov 0   ;;  %v575_v1 = vld [vmem:[#allocation5 + $0x38] sm:$0xff]   ;;  %v576_v2 = vld [vmem:[#allocation5 + $0x30] sm:$0xff]  }
  0x34   :  { %506 = vmatprep.subr.bf16.mxu0 %v721_v0  ;;  %522 = vmatprep.mubr.msk.bf16.mxu0 %vm722_vm0, %v721_v0  ;;  %v577_v3 = vld [vmem:[#allocation5 + $0x28] sm:$0xff]   ;;  %v578_v4 = vld [vmem:[#allocation5 + $0x20] sm:$0xff]   ;;  %v579_v5 = vld [vmem:[#allocation5 + $0x18] sm:$0xff]   ;;  %s723_s23 = smov [#allocation10]  }
  0x35   :  { %526 = vmatprep.subr.bf16.mxu1 %v721_v0  ;;  %542 = vmatprep.mubr.msk.bf16.mxu1 %vm722_vm0, %v721_v0  ;;  %v580_v6 = vld [vmem:[#allocation5 + $0x10] sm:$0xff]   ;;  %v581_v7 = vld [vmem:[#allocation5 + $0x8] sm:$0xff]   ;;  %v582_v8 = vld [vmem:[#allocation5] sm:$0xff]   ;;  %s440_s24 = sshll.u32 %s723_s23, 4  ;;  %s441_s24 = int_to_ptr.vmem [resolvable:$true] %s440_s24 }
  0x36   :  { %507 = vmatpush3.bf16.msra.mxu0 %v575_v1  ;;  %v81_v9 = vld [vmem:[#allocation2] sm:$0xf]  ;;  %v584_v11 = vld [vmem:[#allocation7 + $0x30] sm:$0xff]   ;;  %v585_v12 = vld [vmem:[#allocation7 + $0x28] sm:$0xff]   ;;  %s687_s25 = scalar_lea.vmem %s441_s24, 128  ;;  %p692_p7 = scmp.lt.s32.totalorder %s441_s24, %s441_s24 }
  0x37   :  { %508 = vmatprep.subr.bf16.mxu0 %v721_v0  ;;  %v583_v10 = vld [vmem:[#allocation7 + $0x38] sm:$0xff]   ;;  %v586_v13 = vld [vmem:[#allocation7 + $0x20] sm:$0xff]   ;;  %v588_v15 = vld [vmem:[#allocation7 + $0x10] sm:$0xff]   ;;  %p688_p6 = scmp.ne.s32.totalorder %s441_s24, %s687_s25  ;;  %p693_p8 = scmp.lt.s32.totalorder %s687_s25, %s687_s25 }
  0x38   :  { %527 = vmatpush3.bf16.msra.mxu1 %v583_v10  ;;  %v587_v14 = vld [vmem:[#allocation7 + $0x18] sm:$0xff]   ;;  %v589_v16 = vld [vmem:[#allocation7 + $0x8] sm:$0xff]   ;;  %v590_v17 = vld [vmem:[#allocation7] sm:$0xff]  }
  0x39   :  { %528 = vmatprep.subr.bf16.mxu1 %v721_v0  ;;  %v451_v18 = vld [vmem:[%s829_s2] ss:$0 sm:$0xff]  ;;  %v592_v36 = vld [vmem:[#allocation8 + $0x30] sm:$0xff]   ;;  %v593_v37 = vld [vmem:[#allocation8 + $0x28] sm:$0xff]   ;;  %p694_p9 = por %p693_p8, %p692_p7 }
  0x3a   :  { %509 = vmatpush3.bf16.msra.mxu0 %v576_v2  ;;  %v461_v29 = vld [vmem:[%s831_s4] ss:$0 sm:$0xff]  ;;  %v594_v42 = vld [vmem:[#allocation8 + $0x20] sm:$0xff]   ;;  %v596_v44 = vld [vmem:[#allocation8 + $0x10] sm:$0xff]  }
  0x3b   :  { %510 = vmatprep.subr.bf16.mxu0 %v721_v0  ;;  %v591_v35 = vld [vmem:[#allocation8 + $0x38] sm:$0xff]   ;;  %v597_v45 = vld [vmem:[#allocation8 + $0x8] sm:$0xff]   ;;  %v598_v46 = vld [vmem:[#allocation8] sm:$0xff]   ;;  %p695_p10 = pnand %p694_p9, %p688_p6 }
  0x3c   :  { %529 = vmatpush3.bf16.msra.mxu1 %v584_v11  ;;  %v595_v43 = vld [vmem:[#allocation8 + $0x18] sm:$0xff]  }
  0x3d   :  { %530 = vmatprep.subr.bf16.mxu1 %v721_v0  ;;  %v470_v52 = vld [vmem:[%s833_s6] ss:$0 sm:$0xff] }
  0x3e   :  { %511 = vmatpush3.bf16.msra.mxu0 %v577_v3 }
  0x3f   :  { %512 = vmatprep.subr.bf16.mxu0 %v721_v0 }
  0x40   :  { %531 = vmatpush3.bf16.msra.mxu1 %v585_v12 }
  0x41   :  { %532 = vmatprep.subr.bf16.mxu1 %v721_v0 }
  0x42   :  { %513 = vmatpush3.bf16.msra.mxu0 %v578_v4 }
  0x43   :  { %514 = vmatprep.subr.bf16.mxu0 %v721_v0 }
  0x44   :  { %533 = vmatpush3.bf16.msra.mxu1 %v586_v13 }
  0x45   :  { %534 = vmatprep.subr.bf16.mxu1 %v721_v0 }
  0x46   :  { %515 = vmatpush3.bf16.msra.mxu0 %v579_v5 }
  0x47   :  { %516 = vmatprep.subr.bf16.mxu0 %v721_v0 }
  0x48   :  { %535 = vmatpush3.bf16.msra.mxu1 %v587_v14 }
  0x49   :  { %536 = vmatprep.subr.bf16.mxu1 %v721_v0 }
  0x4a   :  { %517 = vmatpush3.bf16.msra.mxu0 %v580_v6 }
  0x4b   :  { %518 = vmatprep.subr.bf16.mxu0 %v721_v0 }
  0x4c   :  { %537 = vmatpush3.bf16.msra.mxu1 %v588_v15 }
  0x4d   :  { %538 = vmatprep.subr.bf16.mxu1 %v721_v0 }
  0x4e   :  { %519 = vmatpush3.bf16.msra.mxu0 %v581_v7 }
  0x4f   :  { %520 = vmatprep.subr.bf16.mxu0 %v721_v0 }
  0x50   :  { %539 = vmatpush3.bf16.msra.mxu1 %v589_v16 }
  0x51   :  { %540 = vmatprep.subr.bf16.mxu1 %v721_v0 }
  0x52   :  { %521 = vmatpush3.bf16.msra.mxu0 %v582_v8 }
  0x53   :  { %546 = vmatprep.subr.bf16.mxu0 %v721_v0 }
  0x54   :  { %541 = vmatpush3.bf16.msra.mxu1 %v590_v17 }
  0x55   :  { %523 = vmatmul.mubr.bf16.vlgmr.msra.gmra.mxu0 %v81_v9 }
  0x56   :  { %562 = vmatprep.mubr.msk.bf16.mxu0 %vm722_vm0, %v721_v0  ;;  %547 = vmatpush3.bf16.msra.mxu0 %v591_v35 }
  0x57   :  { %548 = vmatprep.subr.bf16.mxu0 %v721_v0 }
  0x5a   :  { %549 = vmatpush3.bf16.msra.mxu0 %v592_v36 }
  0x5b   :  { %550 = vmatprep.subr.bf16.mxu0 %v721_v0 }
  0x5e   :  { %551 = vmatpush3.bf16.msra.mxu0 %v593_v37 }
  0x5f   :  { %552 = vmatprep.subr.bf16.mxu0 %v721_v0 }
  0x62   :  { %553 = vmatpush3.bf16.msra.mxu0 %v594_v42 }
  0x63   :  { %554 = vmatprep.subr.bf16.mxu0 %v721_v0 }
  0x66   :  { %555 = vmatpush3.bf16.msra.mxu0 %v595_v43 }
  0x67   :  { %556 = vmatprep.subr.bf16.mxu0 %v721_v0 }
  0x6a   :  { %557 = vmatpush3.bf16.msra.mxu0 %v596_v44 }
  0x6b   :  { %558 = vmatprep.subr.bf16.mxu0 %v721_v0 }
  0x6e   :  { %559 = vmatpush3.bf16.msra.mxu0 %v597_v45 }
  0x6f   :  { %560 = vmatprep.subr.bf16.mxu0 %v721_v0 }
  0x72   :  { %561 = vmatpush3.bf16.msra.mxu0 %v598_v46 }
 0x115   :  { %v187_v19 = vpop.f32.mrf.mxu0 }
 0x116   :  { %v188_v20 = vadd.f32 %v451_v18, %v187_v19 }
 0x117   :  { %v524_v21 = vpop.f32.mrf.mxu0 }
 0x118   :  { %v460_v22 = vmul.f32 -1.442695, %v188_v20 }
 0x119   :  { %v190_v23 = vpop.f32.mrf.mxu0 }
 0x11a   :  { %599 = vpow2.f32 %v460_v22 }
 0x11b   :  { %v525_v24 = vpop.f32.mrf.mxu0 }
 0x127   :  { %v600_v25 = vpop.eup %599 }
 0x128   :  { %v196_v26 = vadd.f32 1.0, %v600_v25 }
 0x12a   :  { %601 = vrcp.f32 %v196_v26 }
 0x137   :  { %v602_v27 = vpop.eup %601 }
 0x138   :  { %v199_v28 = vpack.c.bf16 %v602_v27, %v602_v27 }
 0x13a   :  { %543 = vmatmul.mubr.bf16.vlgmr.msra.gmra.mxu1 %v199_v28 }
 0x1fa   :  { %v305_v30 = vpop.f32.mrf.mxu1 }
 0x1fb   :  { %v306_v31 = vadd.f32 %v461_v29, %v305_v30 }
 0x1fc   :  { %v544_v32 = vpop.f32.mrf.mxu1 }
 0x1fd   :  { %311 = vmax.xlane.f32.xlu0 %v306_v31 }
 0x1fe   :  { %v308_v33 = vpop.f32.mrf.mxu1 }
 0x200   :  { %v545_v34 = vpop.f32.mrf.mxu1 }
 0x286   :  { %v312_v38 = vpop.xlane.xlu0 %311 }
 0x287   :  { %v313_v39 = vsub.f32 %v306_v31, %v312_v38 }
 0x289   :  { %v314_v40 = vmul.f32 1.442695, %v313_v39 }
 0x28b   :  { %603 = vpow2.f32 %v314_v40 }
 0x298   :  { %v604_v41 = vpop.eup %603 }
 0x299   :  { %316 = vadd.xlane.f32.xlu0 %v604_v41 }
 0x322   :  { %v317_v47 = vpop.xlane.xlu0 %316 }
 0x323   :  { %605 = vlog2.f32 %v317_v47 }
 0x330   :  { %v606_v48 = vpop.eup %605 }
 0x331   :  { %v319_v49 = vmul.f32 0.6931472, %v606_v48 }
 0x333   :  { %v320_v50 = vsub.f32 %v313_v39, %v319_v49 }
 0x335   :  { %v321_v51 = vpack.c.bf16 %v320_v50, %v320_v50 }
 0x337   :  { %563 = vmatmul.mubr.bf16.vlgmr.msra.gmra.mxu0 %v321_v51 }
 0x3f7   :  { %v427_v53 = vpop.f32.mrf.mxu0 }
 0x3f8   :  { %v428_v54 = vadd.f32 %v470_v52, %v427_v53 }
 0x3f9   :  { %v564_v55 = vpop.f32.mrf.mxu0 }
 0x3fa   :  { %433 = vst [vmem:[#allocation10] sm:$0xff] %v428_v54 }
 0x3fb   :  { %v430_v56 = vpop.f32.mrf.mxu0 }
 0x3fc   :  { %698 = shalt.err (!%p695_p10)
}
 0x3fd   :  { %443 = dma.vmem_to_hbm [thread:$0]  %s441_s24, 128, %s834_s7, [#allocation4]   ;;  %v565_v57 = vpop.f32.mrf.mxu0 }
 0x3fe   :  { %713 = dma.done.wait [#allocation4], 128  }
 0x3ff   :  { %714 = vsyncadd [#allocation4], 4294967168 }
 0x400   :  { %447 = vsyncpa [#allocation3], 1 }
 0x401   :  { %448 = vsyncpa [#allocation6], 1 }
 0x402   :  { %449 = vsyncpa [#allocation9], 1 }
 0x403   :  { %450 = vsyncpa [#allocation4], 1 }

</bundles_post_ra>
